<compile_context>
chip_gen: v7x
topology: tpu7x:2x2x1
jax: 0.10.0
libtpu: 0.0.40
codegen_flags: <defaults>
</compile_context>

<pallas_src>
import math
from functools import partial

import jax
import jax.numpy as jnp
from jax.experimental import pallas as pl
from jax.experimental.pallas import tpu as pltpu


# ----------------------------- fused SDPA kernel ----------------------------
def sdpa_kernel(*refs, inv_temp, has_mask):
    if has_mask:
        q_ref, k_ref, v_ref, bias_ref, o_ref, attn_ref = refs
    else:
        q_ref, k_ref, v_ref, o_ref, attn_ref = refs

    # scale in f32, then cast MXU operands to bf16 (f32 accumulation on the MXU)
    q = (q_ref[0, 0] * inv_temp).astype(jnp.bfloat16)      # (tq, Dk)
    k = k_ref[0, 0].astype(jnp.bfloat16)                   # (S,  Dk)

    # scores: (tq, Dk) x (S, Dk)^T -> (tq, S), f32 accumulation
    s = jax.lax.dot_general(
        q, k,
        dimension_numbers=(((1,), (1,)), ((), ())),
        preferred_element_type=jnp.float32)

    if has_mask:
        s = s + bias_ref[0, 0]                              # additive 0 / -1e9 bias

    # numerically-stable softmax over the key axis (all f32)
    s = s - jnp.max(s, axis=-1, keepdims=True)
    p = jnp.exp(s)
    denom = jnp.sum(p, axis=-1, keepdims=True)
    p = p * pl.reciprocal(denom)                            # exact reciprocal (EUP)

    attn_ref[0, 0] = p                                      # lane-dense: S % 128 == 0

    # dropout(p) is identity in eval mode.
    # output: (tq, S) x (S, Dk) -> (tq, Dk), bf16 operands, f32 accumulation
    o_ref[0, 0] = jnp.dot(p.astype(jnp.bfloat16),
                          v_ref[0, 0].astype(jnp.bfloat16),
                          preferred_element_type=jnp.float32)


def _pick_tq(S):
    """Largest query tile <= 256 that divides S (bounds per-step VMEM to O(tq*S))."""
    tq = min(S, 256)
    while S % tq:
        tq //= 2
    return max(tq, 1)


def scaled_dot_product_attention(q, k, v, temperature, mask=None):
    """q, k, v: (B, H, S, Dk) float32. Returns (output, attention_weights)."""
    B, H, S, Dk = q.shape
    has_mask = mask is not None
    inv_temp = 1.0 / float(temperature)
    tq = _pick_tq(S)

    in_specs = [
        pl.BlockSpec((1, 1, tq, Dk), lambda b, h, qi: (b, h, qi, 0)),   # q tile
        pl.BlockSpec((1, 1, S, Dk), lambda b, h, qi: (b, h, 0, 0)),     # full k
        pl.BlockSpec((1, 1, S, Dk), lambda b, h, qi: (b, h, 0, 0)),     # full v
    ]
    operands = [q, k, v]

    if has_mask:
        m = jnp.asarray(mask)
        m = m.reshape((1,) * (4 - m.ndim) + m.shape)        # -> 4D, keep natural dims
        Bm, Hm = m.shape[0], m.shape[1]
        m = jnp.broadcast_to(m, (Bm, Hm, S, S))             # only key/query dims expanded
        bias = jnp.where(m == 0, jnp.float32(-1e9), jnp.float32(0.0))
        in_specs.append(pl.BlockSpec(
            (1, 1, tq, S),
            lambda b, h, qi, _Bm=Bm, _Hm=Hm: (b if _Bm > 1 else 0,
                                              h if _Hm > 1 else 0, qi, 0)))
        operands.append(bias)

    # per-step VMEM budget (double-buffered blocks + softmax intermediates)
    step_bytes = 4 * (2 * tq * Dk + 2 * S * Dk + tq * S * (1 + int(has_mask)))
    vmem_limit = min(max(4 * step_bytes + (4 << 20), 16 << 20), 64 << 20)

    out, attn = pl.pallas_call(
        partial(sdpa_kernel, inv_temp=inv_temp, has_mask=has_mask),
        grid=(B, H, S // tq),
        in_specs=in_specs,
        out_specs=(pl.BlockSpec((1, 1, tq, Dk), lambda b, h, qi: (b, h, qi, 0)),
                   pl.BlockSpec((1, 1, tq, S), lambda b, h, qi: (b, h, qi, 0))),
        out_shape=(jax.ShapeDtypeStruct((B, H, S, Dk), jnp.float32),
                   jax.ShapeDtypeStruct((B, H, S, S), jnp.float32)),
        compiler_params=pltpu.CompilerParams(
            dimension_semantics=("parallel", "parallel", "parallel"),
            vmem_limit_bytes=vmem_limit),
    )(*operands)
    return out, attn


# --------------------------- pure-JAX reference ------------------------------
def ref_sdpa(q, k, v, temperature, mask=None):
    s = jnp.einsum('bhqd,bhkd->bhqk', q / temperature, k, precision='highest')
    if mask is not None:
        s = jnp.where(mask == 0, -1e9, s)
    p = jax.nn.softmax(s, axis=-1)
    o = jnp.einsum('bhqk,bhkd->bhqd', p, v, precision='highest')
    return o, p


# --------------------------------- main ---------------------------------------
if __name__ == "__main__":
    # TPU-friendly small shapes: seq multiple of 128 => lane-dense attn stores
    batch, num_heads, seq_len, d_k = 2, 4, 128, 64
    d_model = num_heads * d_k
    temperature = math.sqrt(d_model)

    key = jax.random.PRNGKey(0)
    kq, kk, kv = jax.random.split(key, 3)
    q = jax.random.normal(kq, (batch, num_heads, seq_len, d_k), jnp.float32)
    k = jax.random.normal(kk, (batch, num_heads, seq_len, d_k), jnp.float32)
    v = jax.random.normal(kv, (batch, num_heads, seq_len, d_k), jnp.float32)

    # bf16 MXU operands => compare against the f32 reference with bf16-level tolerance
    tol = dict(atol=2e-2, rtol=2e-2)

    # mask=None path (module default)
    out, attn = scaled_dot_product_attention(q, k, v, temperature)
    out = jax.block_until_ready(out)
    attn = jax.block_until_ready(attn)
    ref_o, ref_p = ref_sdpa(q, k, v, temperature)
    assert out.shape == (batch, num_heads, seq_len, d_k)
    assert attn.shape == (batch, num_heads, seq_len, seq_len)
    assert jnp.allclose(out, ref_o, **tol)
    assert jnp.allclose(attn, ref_p, **tol)
    # exact reciprocal => rows sum to ~1
    assert jnp.allclose(attn.sum(-1), 1.0, atol=1e-3)

    # masked path (causal mask, natural shape (S,S) -> deduplicated (1,1,S,S) bias)
    causal = jnp.tril(jnp.ones((seq_len, seq_len), jnp.float32))
    out_m, attn_m = scaled_dot_product_attention(q, k, v, temperature, mask=causal)
    out_m = jax.block_until_ready(out_m)
    attn_m = jax.block_until_ready(attn_m)
    mask_full = jnp.broadcast_to(causal, (batch, num_heads, seq_len, seq_len))
    ref_om, ref_pm = ref_sdpa(q, k, v, temperature, mask=mask_full)
    assert jnp.allclose(out_m, ref_om, **tol)
    assert jnp.allclose(attn_m, ref_pm, **tol)

    # TODO(synk): nn.Dropout on the attention weights is a training-time RNG op;
    # it is the identity in eval mode and therefore not applied in-kernel.
    print("KERNEL_OK")
</pallas_src>

<mosaic_0001>
module attributes {stable_mosaic.version = 11 : i64} {
  func.func @sdpa_kernel(%arg0: i32, %arg1: i32, %arg2: i32, %arg3: memref<1x1x128x64xf32, #tpu.memory_space<vmem>>, %arg4: memref<1x1x128x64xf32, #tpu.memory_space<vmem>>, %arg5: memref<1x1x128x64xf32, #tpu.memory_space<vmem>>, %arg6: memref<1x1x128x64xf32, #tpu.memory_space<vmem>>, %arg7: memref<1x1x128x128xf32, #tpu.memory_space<vmem>>) attributes {dimension_semantics = [#tpu.dimension_semantics<parallel>, #tpu.dimension_semantics<parallel>, #tpu.dimension_semantics<parallel>], iteration_bounds = array<i64: 2, 4, 1>, scalar_prefetch = 0 : i64, scratch_operands = 0 : i64, tpu.core_type = #tpu.core_type<tc>, window_params = [{transform_indices = @transform_0, window_bounds = array<i64: 1, 1, 128, 64>}, {transform_indices = @transform_1, window_bounds = array<i64: 1, 1, 128, 64>}, {transform_indices = @transform_2, window_bounds = array<i64: 1, 1, 128, 64>}, {transform_indices = @transform_3, window_bounds = array<i64: 1, 1, 128, 64>}, {transform_indices = @transform_4, window_bounds = array<i64: 1, 1, 128, 128>}]} {
    %c0 = arith.constant 0 : index
    %c0_0 = arith.constant 0 : index
    %c0_1 = arith.constant 0 : index
    %c0_2 = arith.constant 0 : index
    %0 = vector.load %arg3[%c0, %c0_0, %c0_1, %c0_2] : memref<1x1x128x64xf32, #tpu.memory_space<vmem>>, vector<1x1x128x64xf32>
    %1 = vector.shape_cast %0 : vector<1x1x128x64xf32> to vector<128x64xf32>
    %cst = arith.constant 6.250000e-02 : f32
    %2 = vector.broadcast %cst : f32 to vector<128x64xf32>
    %3 = arith.mulf %1, %2 : vector<128x64xf32>
    %4 = arith.truncf %3 : vector<128x64xf32> to vector<128x64xbf16>
    %c0_3 = arith.constant 0 : index
    %c0_4 = arith.constant 0 : index
    %c0_5 = arith.constant 0 : index
    %c0_6 = arith.constant 0 : index
    %5 = vector.load %arg4[%c0_3, %c0_4, %c0_5, %c0_6] : memref<1x1x128x64xf32, #tpu.memory_space<vmem>>, vector<1x1x128x64xf32>
    %6 = vector.shape_cast %5 : vector<1x1x128x64xf32> to vector<128x64xf32>
    %7 = arith.truncf %6 : vector<128x64xf32> to vector<128x64xbf16>
    %cst_7 = arith.constant dense<0.000000e+00> : vector<128x128xf32>
    %8 = tpu.matmul %4, %7, %cst_7 {dimension_numbers = #tpu.dot_dimension_numbers<[1], [1], [0], [0], [0, 0, 1, 0], [], []>} : vector<128x64xbf16>, vector<128x64xbf16>, vector<128x128xf32> -> vector<128x128xf32>
    %cst_8 = arith.constant dense<0xFF800000> : vector<128xf32>
    %9 = vector.multi_reduction <maximumf>, %8, %cst_8 [1] : vector<128x128xf32> to vector<128xf32>
    %10 = vector.shape_cast %9 : vector<128xf32> to vector<128x1xf32>
    %11 = vector.broadcast %10 : vector<128x1xf32> to vector<128x128xf32>
    %12 = arith.subf %8, %11 : vector<128x128xf32>
    %13 = math.exp %12 : vector<128x128xf32>
    %cst_9 = arith.constant dense<0.000000e+00> : vector<128xf32>
    %14 = vector.multi_reduction <add>, %13, %cst_9 [1] : vector<128x128xf32> to vector<128xf32>
    %15 = vector.shape_cast %14 : vector<128xf32> to vector<128x1xf32>
    %16 = tpu.reciprocal %15 : vector<128x1xf32> -> vector<128x1xf32>
    %17 = vector.broadcast %16 : vector<128x1xf32> to vector<128x128xf32>
    %18 = arith.mulf %13, %17 : vector<128x128xf32>
    %c0_10 = arith.constant 0 : index
    %c0_11 = arith.constant 0 : index
    %c0_12 = arith.constant 0 : index
    %c0_13 = arith.constant 0 : index
    %19 = vector.load %arg7[%c0_10, %c0_11, %c0_12, %c0_13] : memref<1x1x128x128xf32, #tpu.memory_space<vmem>>, vector<1x1x128x128xf32>
    %20 = vector.shape_cast %19 : vector<1x1x128x128xf32> to vector<128x128xf32>
    %21 = vector.shape_cast %18 : vector<128x128xf32> to vector<1x1x128x128xf32>
    tpu.vector_store %arg7[%c0_10, %c0_11, %c0_12, %c0_13], %21 {strides = array<i32>} : memref<1x1x128x128xf32, #tpu.memory_space<vmem>>, vector<1x1x128x128xf32>,
    %22 = arith.truncf %18 : vector<128x128xf32> to vector<128x128xbf16>
    %c0_14 = arith.constant 0 : index
    %c0_15 = arith.constant 0 : index
    %c0_16 = arith.constant 0 : index
    %c0_17 = arith.constant 0 : index
    %23 = vector.load %arg5[%c0_14, %c0_15, %c0_16, %c0_17] : memref<1x1x128x64xf32, #tpu.memory_space<vmem>>, vector<1x1x128x64xf32>
    %24 = vector.shape_cast %23 : vector<1x1x128x64xf32> to vector<128x64xf32>
    %25 = arith.truncf %24 : vector<128x64xf32> to vector<128x64xbf16>
    %cst_18 = arith.constant dense<0.000000e+00> : vector<128x64xf32>
    %26 = tpu.matmul %22, %25, %cst_18 {dimension_numbers = #tpu.dot_dimension_numbers<[1], [0], [0], [1], [0, 0, 1, 1], [], []>} : vector<128x128xbf16>, vector<128x64xbf16>, vector<128x64xf32> -> vector<128x64xf32>
    %c0_19 = arith.constant 0 : index
    %c0_20 = arith.constant 0 : index
    %c0_21 = arith.constant 0 : index
    %c0_22 = arith.constant 0 : index
    %27 = vector.load %arg6[%c0_19, %c0_20, %c0_21, %c0_22] : memref<1x1x128x64xf32, #tpu.memory_space<vmem>>, vector<1x1x128x64xf32>
    %28 = vector.shape_cast %27 : vector<1x1x128x64xf32> to vector<128x64xf32>
    %29 = vector.shape_cast %26 : vector<128x64xf32> to vector<1x1x128x64xf32>
    tpu.vector_store %arg6[%c0_19, %c0_20, %c0_21, %c0_22], %29 {strides = array<i32>} : memref<1x1x128x64xf32, #tpu.memory_space<vmem>>, vector<1x1x128x64xf32>,
    return
  }
  func.func @transform_0(%arg0: i32, %arg1: i32, %arg2: i32) -> (i32, i32, i32, i32) {
    %c0_i32 = arith.constant 0 : i32
    %c0_i32_0 = arith.constant 0 : i32
    return %arg0, %arg1, %arg2, %c0_i32 : i32, i32, i32, i32
  }
  func.func @transform_1(%arg0: i32, %arg1: i32, %arg2: i32) -> (i32, i32, i32, i32) {
    %c0_i32 = arith.constant 0 : i32
    %c0_i32_0 = arith.constant 0 : i32
    %c0_i32_1 = arith.constant 0 : i32
    return %arg0, %arg1, %c0_i32, %c0_i32_0 : i32, i32, i32, i32
  }
  func.func @transform_2(%arg0: i32, %arg1: i32, %arg2: i32) -> (i32, i32, i32, i32) {
    %c0_i32 = arith.constant 0 : i32
    %c0_i32_0 = arith.constant 0 : i32
    %c0_i32_1 = arith.constant 0 : i32
    return %arg0, %arg1, %c0_i32, %c0_i32_0 : i32, i32, i32, i32
  }
  func.func @transform_3(%arg0: i32, %arg1: i32, %arg2: i32) -> (i32, i32, i32, i32) {
    %c0_i32 = arith.constant 0 : i32
    %c0_i32_0 = arith.constant 0 : i32
    return %arg0, %arg1, %arg2, %c0_i32 : i32, i32, i32, i32
  }
  func.func @transform_4(%arg0: i32, %arg1: i32, %arg2: i32) -> (i32, i32, i32, i32) {
    %c0_i32 = arith.constant 0 : i32
    %c0_i32_0 = arith.constant 0 : i32
    return %arg0, %arg1, %arg2, %c0_i32 : i32, i32, i32, i32
  }
}

</mosaic_0001>

<bundles_post_ra>
// kernel: tpu_custom_call.1
= control target key start
LH: loop header
LB: loop body
LE: loop exit
PB: predicated region body
PF: predicated region fallthrough
CT: control target
= control target key end

     0   :  { %10 = vsyncpa [#allocation3], 0  ;;  %s1878_s0 = inlined_call_operand.vmem [shape: f32[2,4,128,64], index: 0, kind: input, shape index: {}]   ;;  %s1879_s1 = inlined_call_operand.vmem [shape: f32[2,4,128,64], index: 1, kind: input, shape index: {}]   ;;  %s1880_s2 = inlined_call_operand.vmem [shape: f32[2,4,128,64], index: 2, kind: input, shape index: {}]   ;;  %s1881_s3 = inlined_call_operand.vmem [shape: f32[2,4,128,64], index: 3, kind: output, shape index: {0}]   ;;  %s1882_s4 = inlined_call_operand.hbm [shape: f32[2,4,128,128], index: 4, kind: output, shape index: {1}]  }
   0x1   :  { %12 = vsyncpa [#allocation3 + $0x1], 0  ;;  %s1484_s15 = smov 0   ;;  %s1486_s16 = smov 0  }
   0x2   :  { %s1488_s17 = smov 0   ;;  %s1490_s18 = smov 0  }
   0x3   :  { %s1492_s19 = smov 0   ;;  %s1494_s20 = smov 0  }
   0x4   :  { %s1496_s21 = smov 0   ;;  %s1498_s22 = smov 0  }
   0x5 LB: > { %s1087_s23 = sadd.s32 4294967295, %s1454_s22   ;;  %s1088_s24 = sadd.s32 4294967294, %s1454_s22   ;;  %s1454_s22 = sphi %s1498_s22, %s18_s22   ;;  %s1450_s21 = sphi %s1496_s21, %s1891_s21   ;;  %s1446_s20 = sphi %s1494_s20, %s1890_s20   ;;  %s1442_s19 = sphi %s1492_s19, %s1889_s19   ;;  %s1438_s18 = sphi %s1490_s18, %s1888_s18   ;;  %s1434_s17 = sphi %s1488_s17, %s1887_s17   ;;  %s1430_s16 = sphi %s1486_s16, %s1886_s16   ;;  %s1426_s15 = sphi %s1484_s15, %s1885_s15  }
   0x6   : > { %s33_s25 = sadd.s32 1, %s1446_s20  ;;  %s37_s26 = sadd.s32 1, %s1450_s21 }
   0x7   : > { %p35_p0 = scmp.ge.s32.totalorder %s33_s25, 4  ;;  %p174_p1 = scmp.ne.s32.totalorder %s1434_s17, %s1430_s16 }
   0x8   : > { %p175_p2 = scmp.eq.s32.totalorder %s1087_s23, 7  ;;  %p180_p5 = scmp.ne.s32.totalorder %s1430_s16, %s1426_s15 }
   0x9   : > { %s1893_s25 = smov (%p35_p0, %s33_s25), 0  ;;  %s1895_s26 = smov (!%p35_p0, %s37_s26), %s1450_s21 }
   0xa   : > { %s158_s27 = ssub.s32 %s1446_s20, %s1893_s25  ;;  %p1535_p3 = por %p175_p2, %p174_p1 }
   0xb   : > { %p39_p4 = scmp.ge.s32.totalorder %s1895_s26, 2  ;;  %p181_p6 = scmp.eq.s32.totalorder %s1088_s24, 7 }
   0xc   : > { %p1091_p7 = scmp.ge.s32.totalorder %s1454_s22, 1  ;;  %p240_p9 = scmp.lt.s32.totalorder %s1454_s22, 9 }
   0xd   : > { %s1897_s26 = smov (%p39_p4, %s1895_s26), 0  ;;  %p1544_p8 = por %p181_p6, %p180_p5 }
   0xe   : > { %s157_s30 = ssub.s32 %s1450_s21, %s1897_s26  ;;  %s164_s5 = sadd.s32 1, %s1434_s17 }
   0xf   : > { %s159_s6 = sor.u32 %s158_s27, %s157_s30  ;;  %p241_p10 = pnand %p1091_p7, %p240_p9 }
  0x10   : > { %p162_p11 = scmp.eq.s32.totalorder %s159_s6, 0  ;;  %p306_p12 = scmp.lt.s32.totalorder (!%p241_p10), %s1442_s19, 1  ;;  %vm417_vm0 = vcmask (!%p241_p10), 523264  }
  0x11   : > { %244 = sbr.rel (%p241_p10) target bundleno = 874 (0x36a), region = 32  ;;  %p308_p13 = scmp.lt.s32.totalorder (!%p241_p10), %s1438_s18, 3 }
  0x12   : > { %s1553_s7 = scalar_select %p162_p11, %s1434_s17, %s164_s5  }
  0x13   : > { %s1114_s14 = sshll.u32 (!%p241_p10), %s1438_s18, 4  ;;  %s1115_s23 = sshll.u32 (!%p241_p10), %s1442_s19, 6 }
  0x18   : > { %s307_s8 = scalar_select %p306_p12, %s1442_s19, 1 }
  0x19   : > { %s309_s9 = scalar_select %p308_p13, %s1438_s18, 3 }
  0x1a   : > { %s1094_s10 = sshll.u32 %s307_s8, 6  ;;  %s1456_s18 = smov [#allocation2]  }
  0x1b   : > { %s1093_s11 = sshll.u32 %s309_s9, 4  ;;  %s1364_s19 = sshll.u32 %s1456_s18, 4  ;;  %s1365_s19 = int_to_ptr.vmem [resolvable:$false] %s1364_s19 }
  0x1c   : > { %s315_s12 = sadd.s32 %s1094_s10, %s1093_s11  ;;  %s302_s10 = sand.u32 1, %s1430_s16  }
  0x1d   : > { %s1559_s13 = sshll.u32 %s315_s12, 3  ;;  %s1092_s11 = sshll.u32 %s302_s10, 7 }
  0x1e   : > { %s1565_s24 = scalar_lea.vmem %s1879_s1, %s1559_s13  ;;  %s1575_s5 = scalar_lea.vmem %s1878_s0, %s1559_s13 }
  0x1f   : > { %v393_v0 = vld [vmem:[%s1565_s24] sm:$0xff]  ;;  %v394_v1 = vld [vmem:[%s1565_s24 + $0x8] sm:$0xff]  ;;  %v395_v2 = vld [vmem:[%s1565_s24 + $0x10] sm:$0xff]  ;;  %s1663_s9 = scalar_lea.vmem %s1880_s2, %s1559_s13  ;;  %s1743_s12 = scalar_lea.vmem [#allocation2], %s1092_s11 }
  0x20   : > { %v409_v3 = vpack.c.bf16 %v394_v1, %v393_v0  ;;  %v396_v4 = vld [vmem:[%s1565_s24 + $0x18] sm:$0xff]  ;;  %v353_v7 = vld [vmem:[%s1575_s5] sm:$0xff]  ;;  %v354_v8 = vld [vmem:[%s1575_s5 + $0x8] sm:$0xff]  ;;  %s903_s30 = sshll.u32 %s1743_s12, 4  ;;  %s1784_s30 = int_to_ptr.vmem [resolvable:$true] %s903_s30 }
  0x21   : > { %v410_v5 = vpack.c.bf16 %v396_v4, %v395_v2  ;;  %v397_v9 = vld [vmem:[%s1565_s24 + $0x20] sm:$0xff]  ;;  %v398_v10 = vld [vmem:[%s1565_s24 + $0x28] sm:$0xff]  ;;  %v369_v11 = vmul.f32 0.0625, %v353_v7  ;;  %v370_v12 = vmul.f32 0.0625, %v354_v8  ;;  %v399_v16 = vld [vmem:[%s1565_s24 + $0x30] sm:$0xff]  ;;  %s1360_s11 = scalar_lea.vmem %s1784_s30, 2048  ;;  %p1367_p4 = scmp.lt.s32.totalorder %s1784_s30, %s1365_s19 }
  0x22   : > { %1215 = vmatprep.subr.msk.bf16.mxu0 %vm417_vm0, %v409_v3  ;;  %v443_v6 = vsel %vm417_vm0, %v409_v3, 0  ;;  %v411_v14 = vpack.c.bf16 %v398_v10, %v397_v9  ;;  %v400_v17 = vld [vmem:[%s1565_s24 + $0x38] sm:$0xff]  ;;  %v401_v20 = vld [vmem:[%s1565_s24 + $0x40] sm:$0xff]  ;;  %v402_v21 = vld [vmem:[%s1565_s24 + $0x48] sm:$0xff]  ;;  %p1361_p0 = scmp.ne.s32.totalorder %s1784_s30, %s1360_s11 }
  0x23   : > { %1152 = vmatpush3.bf16.xpose.msra.mxu0 %v443_v6  ;;  %v446_v13 = vsel %vm417_vm0, %v410_v5, 0  ;;  %v385_v15 = vpack.c.bf16 %v370_v12, %v369_v11  ;;  %v412_v19 = vpack.c.bf16 %v400_v17, %v399_v16  ;;  %v413_v23 = vpack.c.bf16 %v402_v21, %v401_v20  ;;  %v403_v24 = vld [vmem:[%s1565_s24 + $0x50] sm:$0xff]  ;;  %v404_v25 = vld [vmem:[%s1565_s24 + $0x58] sm:$0xff]  ;;  %v405_v28 = vld [vmem:[%s1565_s24 + $0x60] sm:$0xff] }
  0x24   : > { %1216 = vmatprep.subr.msk.bf16.mxu0 %vm417_vm0, %v410_v5  ;;  %v449_v18 = vsel %vm417_vm0, %v411_v14, 0  ;;  %v414_v27 = vpack.c.bf16 %v404_v25, %v403_v24  ;;  %v406_v29 = vld [vmem:[%s1565_s24 + $0x68] sm:$0xff]  ;;  %v407_v32 = vld [vmem:[%s1565_s24 + $0x70] sm:$0xff]  ;;  %v408_v33 = vld [vmem:[%s1565_s24 + $0x78] sm:$0xff]  ;;  %s900_s24 = sadd.s32 %s1115_s23, %s1114_s14  ;;  %p1362_p1 = pnand %p1361_p0, %p1535_p3 }
  0x25   : > { %1167 = vmatprep.mubr.msk.bf16.mxu0 %vm417_vm0, %v385_v15  ;;  %v452_v22 = vsel %vm417_vm0, %v412_v19, 0  ;;  %v455_v26 = vsel %vm417_vm0, %v413_v23, 0  ;;  %v415_v31 = vpack.c.bf16 %v406_v29, %v405_v28  ;;  %v416_v35 = vpack.c.bf16 %v408_v33, %v407_v32  ;;  %v355_v36 = vld [vmem:[%s1575_s5 + $0x10] sm:$0xff]  ;;  %v356_v37 = vld [vmem:[%s1575_s5 + $0x18] sm:$0xff]  ;;  %v357_v39 = vld [vmem:[%s1575_s5 + $0x20] sm:$0xff]  ;;  %s1116_s27 = sshll.u32 %s900_s24, 7 }
  0x26   : > { %v458_v30 = vsel %vm417_vm0, %v414_v27, 0  ;;  %v358_v40 = vld [vmem:[%s1575_s5 + $0x28] sm:$0xff]  ;;  %v371_v41 = vmul.f32 0.0625, %v355_v36  ;;  %v372_v42 = vmul.f32 0.0625, %v356_v37  ;;  %v373_v43 = vmul.f32 0.0625, %v357_v39  ;;  %v359_v47 = vld [vmem:[%s1575_s5 + $0x30] sm:$0xff]  ;;  %s1782_s8 = scalar_lea.hbm %s1882_s4, %s1116_s27  ;;  %p1363_p2 = pneg %p1362_p1 }
  0x27   : > { %v461_v34 = vsel %vm417_vm0, %v415_v31, 0  ;;  %v464_v38 = vsel %vm417_vm0, %v416_v35, 0  ;;  %v374_v44 = vmul.f32 0.0625, %v358_v40  ;;  %v360_v48 = vld [vmem:[%s1575_s5 + $0x38] sm:$0xff]  ;;  %v361_v49 = vld [vmem:[%s1575_s5 + $0x40] sm:$0xff]  ;;  %v362_v50 = vld [vmem:[%s1575_s5 + $0x48] sm:$0xff] }
  0x28   : > { %v386_v45 = vpack.c.bf16 %v372_v42, %v371_v41  ;;  %v375_v51 = vmul.f32 0.0625, %v359_v47  ;;  %v376_v52 = vmul.f32 0.0625, %v360_v48  ;;  %v377_v53 = vmul.f32 0.0625, %v361_v49  ;;  %v363_v57 = vld [vmem:[%s1575_s5 + $0x50] sm:$0xff]  ;;  %v364_v58 = vld [vmem:[%s1575_s5 + $0x58] sm:$0xff]  ;;  %v365_v59 = vld [vmem:[%s1575_s5 + $0x60] sm:$0xff] }
  0x29   : > { %v387_v46 = vpack.c.bf16 %v374_v44, %v373_v43  ;;  %v378_v54 = vmul.f32 0.0625, %v362_v50  ;;  %v366_v60 = vld [vmem:[%s1575_s5 + $0x68] sm:$0xff]  ;;  %v379_v61 = vmul.f32 0.0625, %v363_v57  ;;  %v380_v62 = vmul.f32 0.0625, %v364_v58  ;;  %v367_v3 = vld [vmem:[%s1575_s5 + $0x70] sm:$0xff]  ;;  %v368_v4 = vld [vmem:[%s1575_s5 + $0x78] sm:$0xff] }
  0x2a   : > { %v388_v55 = vpack.c.bf16 %v376_v52, %v375_v51  ;;  %v381_v63 = vmul.f32 0.0625, %v365_v59  ;;  %v382_v0 = vmul.f32 0.0625, %v366_v60  ;;  %v383_v5 = vmul.f32 0.0625, %v367_v3  ;;  %v731_v24 = vld [vmem:[%s1663_s9] sm:$0xff]  ;;  %v732_v25 = vld [vmem:[%s1663_s9 + $0x8] sm:$0xff]  ;;  %v734_v28 = vld [vmem:[%s1663_s9 + $0x18] sm:$0xff] }
  0x2b   : > { %1154 = vmatpush3.bf16.xpose.msra.mxu0 %v446_v13  ;;  %v389_v56 = vpack.c.bf16 %v378_v54, %v377_v53  ;;  %v390_v1 = vpack.c.bf16 %v380_v62, %v379_v61  ;;  %v384_v6 = vmul.f32 0.0625, %v368_v4 }
  0x2c   : > { %1217 = vmatprep.subr.msk.bf16.mxu0 %vm417_vm0, %v411_v14  ;;  %v391_v2 = vpack.c.bf16 %v382_v0, %v381_v63 }
  0x2d   : > { %v392_v7 = vpack.c.bf16 %v384_v6, %v383_v5 }
  0x33   : > { %1156 = vmatpush3.bf16.xpose.msra.mxu0 %v449_v18 }
  0x34   : > { %1218 = vmatprep.subr.msk.bf16.mxu0 %vm417_vm0, %v412_v19 }
  0x3b   : > { %1158 = vmatpush3.bf16.xpose.msra.mxu0 %v452_v22 }
  0x3c   : > { %1219 = vmatprep.subr.msk.bf16.mxu0 %vm417_vm0, %v413_v23 }
  0x43   : > { %1160 = vmatpush3.bf16.xpose.msra.mxu0 %v455_v26  ;;  %v733_v26 = vld [vmem:[%s1663_s9 + $0x10] sm:$0xff] }
  0x44   : > { %1220 = vmatprep.subr.msk.bf16.mxu0 %vm417_vm0, %v414_v27  ;;  %v747_v27 = vpack.c.bf16 %v732_v25, %v731_v24  ;;  %v748_v29 = vpack.c.bf16 %v734_v28, %v733_v26  ;;  %v737_v25 = vld [vmem:[%s1663_s9 + $0x30] sm:$0xff]  ;;  %v738_v26 = vld [vmem:[%s1663_s9 + $0x38] sm:$0xff] }
  0x46   : > { %1183 = vmatprep.subr.bf16.mxu1 %v747_v27 }
  0x47   : > { %1184 = vmatpush3.bf16.msra.mxu1 %v747_v27 }
  0x48   : > { %1185 = vmatprep.subr.bf16.mxu1 %v748_v29 }
  0x4b   : > { %1162 = vmatpush3.bf16.xpose.msra.mxu0 %v458_v30  ;;  %v735_v30 = vld [vmem:[%s1663_s9 + $0x20] sm:$0xff]  ;;  %1186 = vmatpush3.bf16.msra.mxu1 %v748_v29  ;;  %v750_v29 = vpack.c.bf16 %v738_v26, %v737_v25 }
  0x4c   : > { %1221 = vmatprep.subr.msk.bf16.mxu0 %vm417_vm0, %v415_v31  ;;  %v736_v31 = vld [vmem:[%s1663_s9 + $0x28] sm:$0xff] }
  0x4d   : > { %v749_v32 = vpack.c.bf16 %v736_v31, %v735_v30 }
  0x4f   : > { %1187 = vmatprep.subr.bf16.mxu1 %v749_v32 }
  0x50   : > { %1188 = vmatpush3.bf16.msra.mxu1 %v749_v32  ;;  %v739_v32 = vld [vmem:[%s1663_s9 + $0x40] sm:$0xff] }
  0x51   : > { %1189 = vmatprep.subr.bf16.mxu1 %v750_v29 }
  0x53   : > { %1164 = vmatpush3.bf16.xpose.msra.mxu0 %v461_v34 }
  0x54   : > { %1222 = vmatprep.subr.msk.bf16.mxu0 %vm417_vm0, %v416_v35  ;;  %1190 = vmatpush3.bf16.msra.mxu1 %v750_v29 }
  0x5b   : > { %1166 = vmatpush3.bf16.xpose.msra.mxu0 %v464_v38 }
  0x62   : > { %1168 = vmatmul.mubr.msk.bf16.vlgmr.msra.gmra.mrb[0].mxu0 %vm417_vm0, %v386_v45 }
  0x63   : > { %1171 = vmatprep.mubr.msk.bf16.mxu0 %vm417_vm0, %v387_v46 }
  0x6a   : > { %1172 = vmatmul.mubr.msk.bf16.gmra.mrb[4].mxu0 %vm417_vm0, %v388_v55 }
  0x6b   : > { %1175 = vmatprep.mubr.msk.bf16.mxu0 %vm417_vm0, %v389_v56 }
  0x72   : > { %1176 = vmatmul.mubr.msk.bf16.gmra.mrb[8].mxu0 %vm417_vm0, %v390_v1 }
  0x73   : > { %1179 = vmatprep.mubr.msk.bf16.mxu0 %vm417_vm0, %v391_v2 }
  0x7a   : > { %1180 = vmatmul.mubr.msk.bf16.gmra.mrb[12].mxu0 %vm417_vm0, %v392_v7 }
 0x135   : > { %v1169_v8 = vpop.f32.mrb[0].mxu0 }
 0x136   : > { %567 = vmax.xlane.f32.xlu1 %v1169_v8  ;;  %v500_v9 = vpop.f32.mrb[1].mxu0 }
 0x137   : > { %563 = vmax.xlane.f32.xlu0 %v500_v9  ;;  %v1170_v10 = vpop.f32.mrb[2].mxu0 }
 0x138   : > { %v503_v11 = vpop.f32.mrb[3].mxu0 }
 0x13a   : > { %569 = vmax.xlane.f32.xlu1 %v1170_v10 }
 0x13b   : > { %565 = vmax.xlane.f32.xlu0 %v503_v11 }
 0x13d   : > { %v1629_v12 = vpop.f32.mrb[4].mxu0 }
 0x13e   : > { %v516_v13 = vpop.f32.mrb[5].mxu0 }
 0x13f   : > { %571 = vmax.xlane.f32.xlu0 %v516_v13  ;;  %v1631_v14 = vpop.f32.mrb[6].mxu0 }
 0x140   : > { %v519_v15 = vpop.f32.mrb[7].mxu0 }
 0x141   : > { %573 = vmax.xlane.f32.xlu1 %v519_v15 }
 0x143   : > { %575 = vmax.xlane.f32.xlu0 %v1629_v12 }
 0x145   : > { %577 = vmax.xlane.f32.xlu1 %v1631_v14  ;;  %v1635_v16 = vpop.f32.mrb[8].mxu0 }
 0x146   : > { %v1637_v17 = vpop.f32.mrb[9].mxu0 }
 0x147   : > { %579 = vmax.xlane.f32.xlu0 %v1637_v17  ;;  %v1640_v18 = vpop.f32.mrb[10].mxu0 }
 0x148   : > { %v1642_v19 = vpop.f32.mrb[11].mxu0 }
 0x149   : > { %581 = vmax.xlane.f32.xlu1 %v1642_v19 }
 0x14b   : > { %583 = vmax.xlane.f32.xlu0 %v1635_v16 }
 0x14d   : > { %585 = vmax.xlane.f32.xlu1 %v1640_v18  ;;  %v1647_v20 = vpop.f32.mrb[12].mxu0 }
 0x14e   : > { %v1649_v21 = vpop.f32.mrb[13].mxu0 }
 0x14f   : > { %587 = vmax.xlane.f32.xlu0 %v1649_v21  ;;  %v1652_v22 = vpop.f32.mrb[14].mxu0 }
 0x150   : > { %v1654_v23 = vpop.f32.mrb[15].mxu0 }
 0x151   : > { %589 = vmax.xlane.f32.xlu1 %v1654_v23 }
 0x153   : > { %591 = vmax.xlane.f32.xlu0 %v1647_v20 }
 0x155   : > { %593 = vmax.xlane.f32.xlu1 %v1652_v22 }
 0x1c3   : > { %v568_v33 = vpop.xlane.xlu1 %567 }
 0x1c4   : > { %v597_v34 = vsub.f32 %v1169_v8, %v568_v33  ;;  %v564_v35 = vpop.xlane.xlu0 %563  ;;  %v740_v33 = vld [vmem:[%s1663_s9 + $0x48] sm:$0xff] }
 0x1c5   : > { %v595_v36 = vsub.f32 %v500_v9, %v564_v35 }
 0x1c6   : > { %v615_v39 = vmul.f32 1.442695, %v597_v34 }
 0x1c7   : > { %v611_v37 = vmul.f32 1.442695, %v595_v36  ;;  %v570_v38 = vpop.xlane.xlu1 %569  ;;  %v741_v36 = vld [vmem:[%s1663_s9 + $0x50] sm:$0xff] }
 0x1c8   : > { %v598_v40 = vsub.f32 %v1170_v10, %v570_v38  ;;  %v566_v41 = vpop.xlane.xlu0 %565 }
 0x1c9   : > { %1296 = vpow2.f32 %v611_v37  ;;  %v596_v42 = vsub.f32 %v503_v11, %v566_v41  ;;  %v742_v37 = vld [vmem:[%s1663_s9 + $0x58] sm:$0xff]  ;;  %v743_v41 = vld [vmem:[%s1663_s9 + $0x60] sm:$0xff] }
 0x1ca   : > { %1298 = vpow2.f32 %v615_v39  ;;  %v617_v44 = vmul.f32 1.442695, %v598_v40  ;;  %v752_v38 = vpack.c.bf16 %v742_v37, %v741_v36 }
 0x1cb   : > { %v613_v43 = vmul.f32 1.442695, %v596_v42  ;;  %v744_v42 = vld [vmem:[%s1663_s9 + $0x68] sm:$0xff] }
 0x1cc   : > { %v572_v45 = vpop.xlane.xlu0 %571 }
 0x1cd   : > { %1300 = vpow2.f32 %v613_v43  ;;  %v599_v46 = vsub.f32 %v516_v13, %v572_v45  ;;  %v753_v43 = vpack.c.bf16 %v744_v42, %v743_v41  ;;  %v745_v45 = vld [vmem:[%s1663_s9 + $0x70] sm:$0xff] }
 0x1ce   : > { %v574_v47 = vpop.xlane.xlu1 %573  ;;  %1302 = vpow2.f32 %v617_v44 }
 0x1cf   : > { %v619_v48 = vmul.f32 1.442695, %v599_v46  ;;  %v600_v49 = vsub.f32 %v519_v15, %v574_v47  ;;  %v746_v46 = vld [vmem:[%s1663_s9 + $0x78] sm:$0xff]  ;;  %s1788_s9 = scalar_lea.sflag [#allocation3], %s302_s10 }
 0x1d0   : > { %v576_v50 = vpop.xlane.xlu0 %575  ;;  %v754_v47 = vpack.c.bf16 %v746_v46, %v745_v45 }
 0x1d1   : > { %1304 = vpow2.f32 %v619_v48  ;;  %v621_v51 = vmul.f32 1.442695, %v600_v49  ;;  %v601_v52 = vsub.f32 %v1629_v12, %v576_v50 }
 0x1d2   : > { %v578_v53 = vpop.xlane.xlu1 %577 }
 0x1d3   : > { %v1672_v54 = vpop.eup %1296  ;;  %v623_v55 = vmul.f32 1.442695, %v601_v52  ;;  %v602_v56 = vsub.f32 %v1631_v14, %v578_v53  ;;  %1306 = vpow2.f32 %v621_v51 }
 0x1d4   : > { %v580_v57 = vpop.xlane.xlu0 %579  ;;  %643 = vadd.xlane.f32.xlu0 %v1672_v54  ;;  %v1677_v60 = vpop.eup %1298 }
 0x1d5   : > { %1308 = vpow2.f32 %v623_v55  ;;  %v625_v58 = vmul.f32 1.442695, %v602_v56  ;;  %v603_v59 = vsub.f32 %v1637_v17, %v580_v57 }
 0x1d6   : > { %v582_v61 = vpop.xlane.xlu1 %581 }
 0x1d7   : > { %v1679_v62 = vpop.eup %1300  ;;  %v627_v63 = vmul.f32 1.442695, %v603_v59  ;;  %v604_v0 = vsub.f32 %v1642_v19, %v582_v61  ;;  %1310 = vpow2.f32 %v625_v58 }
 0x1d8   : > { %v584_v1 = vpop.xlane.xlu0 %583  ;;  %647 = vadd.xlane.f32.xlu0 %v1677_v60  ;;  %645 = vadd.xlane.f32.xlu1 %v1679_v62  ;;  %v1685_v4 = vpop.eup %1302 }
 0x1d9   : > { %1312 = vpow2.f32 %v627_v63  ;;  %v629_v2 = vmul.f32 1.442695, %v604_v0  ;;  %v605_v3 = vsub.f32 %v1635_v16, %v584_v1 }
 0x1da   : > { %v586_v5 = vpop.xlane.xlu1 %585 }
 0x1db   : > { %v1687_v6 = vpop.eup %1304  ;;  %v631_v7 = vmul.f32 1.442695, %v605_v3  ;;  %v606_v8 = vsub.f32 %v1640_v18, %v586_v5  ;;  %1314 = vpow2.f32 %v629_v2 }
 0x1dc   : > { %651 = vadd.xlane.f32.xlu0 %v1687_v6  ;;  %v588_v9 = vpop.xlane.xlu0 %587  ;;  %649 = vadd.xlane.f32.xlu1 %v1685_v4 }
 0x1dd   : > { %1316 = vpow2.f32 %v631_v7  ;;  %v633_v10 = vmul.f32 1.442695, %v606_v8  ;;  %v607_v11 = vsub.f32 %v1649_v21, %v588_v9  ;;  %v1693_v12 = vpop.eup %1306 }
 0x1de   : > { %v590_v13 = vpop.xlane.xlu1 %589 }
 0x1df   : > { %v1695_v14 = vpop.eup %1308  ;;  %v635_v15 = vmul.f32 1.442695, %v607_v11  ;;  %v608_v16 = vsub.f32 %v1654_v23, %v590_v13  ;;  %1318 = vpow2.f32 %v633_v10 }
 0x1e0   : > { %655 = vadd.xlane.f32.xlu0 %v1695_v14  ;;  %v592_v17 = vpop.xlane.xlu0 %591  ;;  %653 = vadd.xlane.f32.xlu1 %v1693_v12 }
 0x1e1   : > { %1320 = vpow2.f32 %v635_v15  ;;  %v637_v18 = vmul.f32 1.442695, %v608_v16  ;;  %v609_v19 = vsub.f32 %v1647_v20, %v592_v17  ;;  %v1701_v21 = vpop.eup %1310 }
 0x1e2   : > { %v594_v24 = vpop.xlane.xlu1 %593 }
 0x1e3   : > { %v1705_v27 = vpop.eup %1312  ;;  %v639_v23 = vmul.f32 1.442695, %v609_v19  ;;  %v610_v28 = vsub.f32 %v1652_v22, %v594_v24  ;;  %1322 = vpow2.f32 %v637_v18  ;;  %v751_v22 = vpack.c.bf16 %v740_v33, %v739_v32 }
 0x1e4   : > { %659 = vadd.xlane.f32.xlu0 %v1705_v27  ;;  %657 = vadd.xlane.f32.xlu1 %v1701_v21 }
 0x1e5   : > { %1324 = vpow2.f32 %v639_v23  ;;  %v641_v20 = vmul.f32 1.442695, %v610_v28  ;;  %v1710_v30 = vpop.eup %1314  ;;  %1191 = vmatprep.subr.bf16.mxu1 %v751_v22 }
 0x1e6   : > { %1192 = vmatpush3.bf16.msra.mxu1 %v751_v22 }
 0x1e7   : > { %v1712_v31 = vpop.eup %1316  ;;  %1326 = vpow2.f32 %v641_v20  ;;  %1193 = vmatprep.subr.bf16.mxu1 %v752_v38 }
 0x1e8   : > { %663 = vadd.xlane.f32.xlu0 %v1712_v31  ;;  %661 = vadd.xlane.f32.xlu1 %v1710_v30 }
 0x1e9   : > { %v1718_v34 = vpop.eup %1318 }
 0x1ea   : > { %1194 = vmatpush3.bf16.msra.mxu1 %v752_v38 }
 0x1eb   : > { %v1720_v35 = vpop.eup %1320  ;;  %1195 = vmatprep.subr.bf16.mxu1 %v753_v43 }
 0x1ec   : > { %667 = vadd.xlane.f32.xlu0 %v1720_v35  ;;  %665 = vadd.xlane.f32.xlu1 %v1718_v34 }
 0x1ed   : > { %v1726_v39 = vpop.eup %1322 }
 0x1ee   : > { %1196 = vmatpush3.bf16.msra.mxu1 %v753_v43 }
 0x1ef   : > { %v1728_v40 = vpop.eup %1324  ;;  %1197 = vmatprep.subr.bf16.mxu1 %v754_v47 }
 0x1f0   : > { %671 = vadd.xlane.f32.xlu0 %v1728_v40  ;;  %669 = vadd.xlane.f32.xlu1 %v1726_v39 }
 0x1f1   : > { %v1734_v44 = vpop.eup %1326 }
 0x1f2   : > { %1198 = vmatpush3.bf16.msra.mxu1 %v754_v47 }
 0x1f4   : > { %673 = vadd.xlane.f32.xlu1 %v1734_v44 }
 0x261   : > { %v644_v48 = vpop.xlane.xlu0 %643 }
 0x262   : > { %1328 = vrcp.f32 %v644_v48 }
 0x265   : > { %v648_v49 = vpop.xlane.xlu0 %647  ;;  %v646_v50 = vpop.xlane.xlu1 %645 }
 0x266   : > { %1330 = vrcp.f32 %v648_v49 }
 0x267   : > { %1332 = vrcp.f32 %v646_v50 }
 0x269   : > { %v652_v51 = vpop.xlane.xlu0 %651  ;;  %v650_v52 = vpop.xlane.xlu1 %649 }
 0x26a   : > { %1334 = vrcp.f32 %v652_v51 }
 0x26b   : > { %1336 = vrcp.f32 %v650_v52 }
 0x26c   : > { %v1329_v53 = vpop.eup %1328 }
 0x26d   : > { %v656_v55 = vpop.xlane.xlu0 %655  ;;  %v654_v56 = vpop.xlane.xlu1 %653  ;;  %v691_v57 = vmul.f32 %v1329_v53, %v1672_v54 }
 0x26e   : > { %1338 = vrcp.f32 %v656_v55 }
 0x26f   : > { %1340 = vrcp.f32 %v654_v56  ;;  %707 = vst [vmem:[%s1743_s12] sm:$0xff] %v691_v57 }
 0x270   : > { %v1331_v58 = vpop.eup %1330 }
 0x271   : > { %v1333_v59 = vpop.eup %1332  ;;  %v660_v61 = vpop.xlane.xlu0 %659  ;;  %v693_v0 = vmul.f32 %v1331_v58, %v1677_v60 }
 0x272   : > { %v658_v63 = vpop.xlane.xlu1 %657  ;;  %1342 = vrcp.f32 %v660_v61  ;;  %v692_v1 = vmul.f32 %v1333_v59, %v1679_v62 }
 0x273   : > { %1344 = vrcp.f32 %v658_v63  ;;  %709 = vst [vmem:[%s1743_s12 + $0x10] sm:$0xff] %v693_v0 }
 0x274   : > { %v1335_v54 = vpop.eup %1334  ;;  %708 = vst [vmem:[%s1743_s12 + $0x8] sm:$0xff] %v692_v1  ;;  %v723_v2 = vpack.c.bf16 %v692_v1, %v691_v57 }
 0x275   : > { %v1337_v3 = vpop.eup %1336  ;;  %v664_v5 = vpop.xlane.xlu0 %663  ;;  %v695_v8 = vmul.f32 %v1335_v54, %v1687_v6 }
 0x276   : > { %v662_v7 = vpop.xlane.xlu1 %661  ;;  %1346 = vrcp.f32 %v664_v5  ;;  %1199 = vmatprep.mubr.bf16.mxu1 %v723_v2  ;;  %v694_v60 = vmul.f32 %v1337_v3, %v1685_v4 }
 0x277   : > { %1348 = vrcp.f32 %v662_v7  ;;  %711 = vst [vmem:[%s1743_s12 + $0x20] sm:$0xff] %v695_v8 }
 0x278   : > { %v1339_v62 = vpop.eup %1338  ;;  %710 = vst [vmem:[%s1743_s12 + $0x18] sm:$0xff] %v694_v60  ;;  %v724_v9 = vpack.c.bf16 %v694_v60, %v693_v0 }
 0x279   : > { %v1341_v10 = vpop.eup %1340  ;;  %v668_v11 = vpop.xlane.xlu0 %667  ;;  %v697_v15 = vmul.f32 %v1339_v62, %v1695_v14 }
 0x27a   : > { %v666_v13 = vpop.xlane.xlu1 %665  ;;  %1350 = vrcp.f32 %v668_v11  ;;  %1200 = vmatmul.mubr.bf16.vlgmr.msra.gmra.mrb[0].mxu1 %v724_v9  ;;  %v696_v6 = vmul.f32 %v1341_v10, %v1693_v12 }
 0x27b   : > { %1352 = vrcp.f32 %v666_v13  ;;  %713 = vst [vmem:[%s1743_s12 + $0x30] sm:$0xff] %v697_v15 }
 0x27c   : > { %v1343_v4 = vpop.eup %1342  ;;  %712 = vst [vmem:[%s1743_s12 + $0x28] sm:$0xff] %v696_v6  ;;  %v725_v16 = vpack.c.bf16 %v696_v6, %v695_v8 }
 0x27d   : > { %v1345_v17 = vpop.eup %1344  ;;  %v672_v18 = vpop.xlane.xlu0 %671  ;;  %v699_v24 = vmul.f32 %v1343_v4, %v1705_v27 }
 0x27e   : > { %v670_v19 = vpop.xlane.xlu1 %669  ;;  %1354 = vrcp.f32 %v672_v18  ;;  %1203 = vmatprep.mubr.bf16.mxu1 %v725_v16  ;;  %v698_v14 = vmul.f32 %v1345_v17, %v1701_v21 }
 0x27f   : > { %1356 = vrcp.f32 %v670_v19  ;;  %715 = vst [vmem:[%s1743_s12 + $0x40] sm:$0xff] %v699_v24 }
 0x280   : > { %v1347_v12 = vpop.eup %1346  ;;  %714 = vst [vmem:[%s1743_s12 + $0x38] sm:$0xff] %v698_v14  ;;  %v726_v25 = vpack.c.bf16 %v698_v14, %v697_v15 }
 0x281   : > { %v1349_v26 = vpop.eup %1348  ;;  %v701_v28 = vmul.f32 %v1347_v12, %v1712_v31 }
 0x282   : > { %v674_v23 = vpop.xlane.xlu1 %673  ;;  %1204 = vmatmul.mubr.bf16.gmra.mrb[4].mxu1 %v726_v25  ;;  %v700_v27 = vmul.f32 %v1349_v26, %v1710_v30 }
 0x283   : > { %1358 = vrcp.f32 %v674_v23  ;;  %717 = vst [vmem:[%s1743_s12 + $0x50] sm:$0xff] %v701_v28 }
 0x284   : > { %v1351_v29 = vpop.eup %1350  ;;  %716 = vst [vmem:[%s1743_s12 + $0x48] sm:$0xff] %v700_v27  ;;  %v727_v21 = vpack.c.bf16 %v700_v27, %v699_v24 }
 0x285   : > { %v1353_v20 = vpop.eup %1352  ;;  %v703_v32 = vmul.f32 %v1351_v29, %v1720_v35 }
 0x286   : > { %1207 = vmatprep.mubr.bf16.mxu1 %v727_v21  ;;  %v702_v33 = vmul.f32 %v1353_v20, %v1718_v34 }
 0x287   : > { %719 = vst [vmem:[%s1743_s12 + $0x60] sm:$0xff] %v703_v32 }
 0x288   : > { %v1355_v22 = vpop.eup %1354  ;;  %718 = vst [vmem:[%s1743_s12 + $0x58] sm:$0xff] %v702_v33  ;;  %v728_v31 = vpack.c.bf16 %v702_v33, %v701_v28 }
 0x289   : > { %v1357_v30 = vpop.eup %1356  ;;  %v705_v36 = vmul.f32 %v1355_v22, %v1728_v40 }
 0x28a   : > { %1208 = vmatmul.mubr.bf16.gmra.mrb[8].mxu1 %v728_v31  ;;  %v704_v37 = vmul.f32 %v1357_v30, %v1726_v39 }
 0x28b   : > { %721 = vst [vmem:[%s1743_s12 + $0x70] sm:$0xff] %v705_v36 }
 0x28c   : > { %720 = vst [vmem:[%s1743_s12 + $0x68] sm:$0xff] %v704_v37  ;;  %v729_v38 = vpack.c.bf16 %v704_v37, %v703_v32 }
 0x28d   : > { %v1359_v35 = vpop.eup %1358 }
 0x28e   : > { %v706_v34 = vmul.f32 %v1359_v35, %v1734_v44  ;;  %1211 = vmatprep.mubr.bf16.mxu1 %v729_v38 }
 0x290   : > { %722 = vst [vmem:[%s1743_s12 + $0x78] sm:$0xff] %v706_v34  ;;  %v730_v41 = vpack.c.bf16 %v706_v34, %v705_v36  ;;  %s1366_s12 = scalar_lea.vmem %s1365_s19, 4096 }
 0x291   : > { %p1368_p5 = scmp.lt.s32.totalorder %s1366_s12, %s1360_s11 }
 0x292   : > { %1212 = vmatmul.mubr.bf16.gmra.mrb[12].mxu1 %v730_v41 }
 0x293   : > { %p1369_p6 = por %p1368_p5, %p1367_p4 }
 0x295   : > { %p1370_p7 = pnand %p1369_p6, %p1363_p2 }
 0x297   : > { %1373 = shalt.err (!%p1370_p7)
}
 0x298   : > { %s1374_s10 = scalar_lea.hbm %s1782_s8, 2048  ;;  %s1378_s24 = scalar_lea.hbm %s1882_s4, 16384 }
 0x299   : > { %p1375_p9 = scmp.ne.s32.totalorder %s1782_s8, %s1374_s10  ;;  %p1379_p12 = scmp.lt.u32.totalorder %s1782_s8, %s1882_s4 }
 0x29a   : > { %p1380_p13 = scmp.lt.u32.totalorder %s1378_s24, %s1374_s10  ;;  %p1382_p1 = scmp.lt.u32.totalorder %s1374_s10, %s1782_s8 }
 0x29b   : > { %p1376_p10 = pnand %p1375_p9, %p1535_p3 }
 0x29c   : > { %p1381_p0 = por %p1380_p13, %p1379_p12 }
 0x29d   : > { %p1377_p11 = pneg %p1376_p10 }
 0x29e   : > { %p1383_p2 = por %p1382_p1, %p1381_p0 }
 0x2a0   : > { %p1384_p4 = pnand %p1383_p2, %p1377_p11 }
 0x2a2   : > { %1387 = shalt.err (!%p1384_p4)
}
 0x2a3   : > { %s1457_s6 = smov 128   ;;  %s1458_s11 = smov 8  }
 0x2a4   : > { %1223 = dma.vmem_to_hbm [thread:$0]  (%p1535_p3), %s1784_s30, 2048, %s1782_s8, %s1788_s9, %s1457_s6, %s1457_s6, %s1458_s11  }
 0x2a5   : > { %s1816_s12 = scalar_lea.vmem %s1881_s3, %s1559_s13 }
 0x34d   : > { %v1201_v39 = vpop.f32.mrb[0].mxu1 }
 0x34e   : > { %854 = vst.msk [vmem:[%s1816_s12 + $0x10] sm:$0xff] %vm417_vm0, %v1201_v39  ;;  %v789_v40 = vpop.f32.mrb[1].mxu1 }
 0x34f   : > { %852 = vst.msk [vmem:[%s1816_s12] sm:$0xff] %vm417_vm0, %v789_v40  ;;  %v1202_v42 = vpop.f32.mrb[2].mxu1 }
 0x350   : > { %855 = vst.msk [vmem:[%s1816_s12 + $0x18] sm:$0xff] %vm417_vm0, %v1202_v42  ;;  %v792_v43 = vpop.f32.mrb[3].mxu1 }
 0x351   : > { %853 = vst.msk [vmem:[%s1816_s12 + $0x8] sm:$0xff] %vm417_vm0, %v792_v43 }
 0x355   : > { %v1205_v44 = vpop.f32.mrb[4].mxu1 }
 0x356   : > { %858 = vst.msk [vmem:[%s1816_s12 + $0x30] sm:$0xff] %vm417_vm0, %v1205_v44  ;;  %v805_v45 = vpop.f32.mrb[5].mxu1 }
 0x357   : > { %856 = vst.msk [vmem:[%s1816_s12 + $0x20] sm:$0xff] %vm417_vm0, %v805_v45  ;;  %v1206_v46 = vpop.f32.mrb[6].mxu1 }
 0x358   : > { %859 = vst.msk [vmem:[%s1816_s12 + $0x38] sm:$0xff] %vm417_vm0, %v1206_v46  ;;  %v808_v47 = vpop.f32.mrb[7].mxu1 }
 0x359   : > { %857 = vst.msk [vmem:[%s1816_s12 + $0x28] sm:$0xff] %vm417_vm0, %v808_v47 }
 0x35d   : > { %v1209_v48 = vpop.f32.mrb[8].mxu1 }
 0x35e   : > { %862 = vst.msk [vmem:[%s1816_s12 + $0x50] sm:$0xff] %vm417_vm0, %v1209_v48  ;;  %v821_v49 = vpop.f32.mrb[9].mxu1 }
 0x35f   : > { %860 = vst.msk [vmem:[%s1816_s12 + $0x40] sm:$0xff] %vm417_vm0, %v821_v49  ;;  %v1210_v50 = vpop.f32.mrb[10].mxu1 }
 0x360   : > { %863 = vst.msk [vmem:[%s1816_s12 + $0x58] sm:$0xff] %vm417_vm0, %v1210_v50  ;;  %v824_v51 = vpop.f32.mrb[11].mxu1 }
 0x361   : > { %861 = vst.msk [vmem:[%s1816_s12 + $0x48] sm:$0xff] %vm417_vm0, %v824_v51 }
 0x365   : > { %v1213_v52 = vpop.f32.mrb[12].mxu1 }
 0x366   : > { %866 = vst.msk [vmem:[%s1816_s12 + $0x70] sm:$0xff] %vm417_vm0, %v1213_v52  ;;  %v837_v53 = vpop.f32.mrb[13].mxu1 }
 0x367   : > { %864 = vst.msk [vmem:[%s1816_s12 + $0x60] sm:$0xff] %vm417_vm0, %v837_v53  ;;  %v1214_v55 = vpop.f32.mrb[14].mxu1 }
 0x368   : > { %867 = vst.msk [vmem:[%s1816_s12 + $0x78] sm:$0xff] %vm417_vm0, %v1214_v55  ;;  %v840_v56 = vpop.f32.mrb[15].mxu1 }
 0x369   : > { %865 = vst.msk [vmem:[%s1816_s12 + $0x68] sm:$0xff] %vm417_vm0, %v840_v56 }
 0x36a PF: > { %p1229_p3 = scmp.ge.s32.totalorder %s1454_s22, 2  ;;  %s934_s28 = sand.u32 1, %s1426_s15  }
 0x36b   : > { %s935_s13 = scalar_lea.sflag [#allocation3], %s934_s28 }
 0x36c   : > { %p1226_p5 = pnand %p1229_p3, %p1544_p8 }
 0x36e   : > { %1421 = dma.done.wait (!%p1226_p5), %s935_s13, 2048  }
 0x36f   : > { %1423 = vsyncadd (!%p1226_p5), %s935_s13, 4294965248  ;;  %s18_s22 = sadd.s32 1, %s1454_s22   ;;  %s1885_s15 = smov %s1430_s16 }
 0x370   : > { %p15_p6 = scmp.ge.s32.totalorder %s18_s22, 10   ;;  %s1886_s16 = smov %s1434_s17 }
 0x371   : > { %s1887_s17 = smov %s1553_s7  ;;  %s1888_s18 = smov %s1446_s20 }
 0x372   : > { %s1889_s19 = smov %s1450_s21  ;;  %s1890_s20 = smov %s1893_s25 }
 0x373   : > { %s1891_s21 = smov %s1897_s26  ;;  %17 = sbr.rel (!%p15_p6) target bundleno = 5 (0x5), region = 85 }
 0x37a   :  { %940 = vsyncpa [#allocation3], 1 }
 0x37b   :  { %942 = vsyncpa [#allocation3 + $0x1], 1 }

</bundles_post_ra>
